<compile_context>
chip_gen: v6e
topology: v6e:2x2x1
jax: 0.10.0
libtpu: 0.0.40
codegen_flags: <defaults>
</compile_context>

<pallas_src>
import functools

import jax
import jax.numpy as jnp
from jax import lax
from jax.experimental import pallas as pl
from jax.experimental.pallas import tpu as pltpu


def _round_up(v, m):
    return ((v + m - 1) // m) * m


def _softplus(x):
    # Numerically stable softplus, matches torch.nn.functional.softplus (beta=1).
    return jnp.maximum(x, 0.0) + jnp.log(1.0 + jnp.exp(-jnp.abs(x)))


def _cond_model_kernel(n_steps, N,
                       x_ref, c_ref, y_ref,
                       w1x_ref, w1c_ref, b1_ref,
                       emb_ref,
                       w2_ref, b2_ref,
                       w3_ref, b3_ref,
                       w4_ref, b4_ref,
                       o_ref):
    x = x_ref[...]                                   # (TB, dx)  f32
    c = c_ref[...]                                   # (TB, M)   f32
    y = y_ref[...]                                   # (TB, 1)   int32
    tb = x.shape[0]

    # All three embedding lookups as a single one-hot matmul on the MXU
    # (no dynamic gather in the kernel).
    steps = lax.broadcasted_iota(jnp.int32, (tb, n_steps), 1)
    onehot = (steps == y).astype(jnp.float32)        # (TB, n_steps)
    g = jnp.dot(onehot, emb_ref[...],
                preferred_element_type=jnp.float32)  # (TB, 3N) lane-aligned
    g1 = g[:, 0 * N:1 * N]
    g2 = g[:, 1 * N:2 * N]
    g3 = g[:, 2 * N:3 * N]

    # lin1 on cat(x, c): split matmul (mathematically identical, no concat).
    h = (jnp.dot(x, w1x_ref[...], preferred_element_type=jnp.float32)
         + jnp.dot(c, w1c_ref[...], preferred_element_type=jnp.float32)
         + b1_ref[...])
    h = _softplus(g1 * h)

    h = _softplus(g2 * (jnp.dot(h, w2_ref[...],
                                preferred_element_type=jnp.float32) + b2_ref[...]))
    h = _softplus(g3 * (jnp.dot(h, w3_ref[...],
                                preferred_element_type=jnp.float32) + b3_ref[...]))

    o_ref[...] = (jnp.dot(h, w4_ref[...],
                          preferred_element_type=jnp.float32) + b4_ref[...])


def conditional_model_forward(x, y, c, params, *, block_rows=512):
    """x: (B, 2n) f32, y: (B,) int, c: (B, M) f32.  Returns (B, n) f32."""
    x = x.astype(jnp.float32)
    c = c.astype(jnp.float32)
    B, dx = x.shape
    M = c.shape[1]
    N = params["w2"].shape[0]
    n = params["w4"].shape[1]
    n_steps = params["e1"].shape[0]

    # ---- batch tiling (grid over batch, weights resident) -------------------
    TB = min(block_rows, _round_up(B, 8))
    B_pad = pl.cdiv(B, TB) * TB
    if B_pad != B:
        x = jnp.pad(x, ((0, B_pad - B), (0, 0)))
        c = jnp.pad(c, ((0, B_pad - B), (0, 0)))
        y = jnp.pad(y, ((0, B_pad - B),))
    y2d = y.astype(jnp.int32).reshape(B_pad, 1)

    # ---- lane-dense internals: pad hidden N and output n to multiples of 128
    Np = _round_up(max(N, 128), 128)
    np_ = _round_up(max(n, 128), 128)

    def pad_cols(w, cols):
        out = jnp.zeros((w.shape[0], cols), jnp.float32)
        return out.at[:, :w.shape[1]].set(w.astype(jnp.float32))

    def pad_mat(w, rows, cols):
        out = jnp.zeros((rows, cols), jnp.float32)
        return out.at[:w.shape[0], :w.shape[1]].set(w.astype(jnp.float32))

    w1p = pad_cols(params["w1"], Np)                 # (dx+M, Np)
    w1x = w1p[:dx, :]
    w1c = w1p[dx:, :]
    b1 = pad_cols(params["b1"].reshape(1, N), Np)
    b2 = pad_cols(params["b2"].reshape(1, N), Np)
    b3 = pad_cols(params["b3"].reshape(1, N), Np)
    w2p = pad_mat(params["w2"], Np, Np)
    w3p = pad_mat(params["w3"], Np, Np)
    w4p = pad_mat(params["w4"], Np, np_)
    b4p = pad_cols(params["b4"].reshape(1, n), np_)
    # fused embedding table: (n_steps, 3*Np)
    emb = jnp.concatenate([pad_cols(params["e1"], Np),
                           pad_cols(params["e2"], Np),
                           pad_cols(params["e3"], Np)], axis=1)

    grid = (B_pad // TB,)

    batch_spec = lambda shape: pl.BlockSpec(shape, lambda i: (i, 0))
    const_spec = lambda shape: pl.BlockSpec(shape, lambda i: (0, 0))

    in_specs = [
        batch_spec((TB, dx)),          # x
        batch_spec((TB, M)),           # c
        batch_spec((TB, 1)),           # y
        const_spec((dx, Np)),          # w1x
        const_spec((M, Np)),           # w1c
        const_spec((1, Np)),           # b1
        const_spec((n_steps, 3 * Np)), # fused embedding table
        const_spec((Np, Np)),          # w2
        const_spec((1, Np)),           # b2
        const_spec((Np, Np)),          # w3
        const_spec((1, Np)),           # b3
        const_spec((Np, np_)),         # w4 (padded lanes)
        const_spec((1, np_)),          # b4 (padded lanes)
    ]
    out_specs = batch_spec((TB, np_))

    weight_elems = (dx * Np + M * Np + 2 * Np * Np + Np * np_
                    + 3 * n_steps * Np + 3 * Np + np_)
    flops = 2 * B_pad * (3 * n_steps * Np + dx * Np + M * Np
                         + 2 * Np * Np + Np * np_)
    cost = pl.CostEstimate(
        flops=flops,
        transcendentals=6 * B_pad * Np,                      # exp+log per softplus
        bytes_accessed=4 * (B_pad * (dx + M + 1 + np_) + weight_elems),
    )

    out = pl.pallas_call(
        functools.partial(_cond_model_kernel, n_steps, Np),
        out_shape=jax.ShapeDtypeStruct((B_pad, np_), jnp.float32),
        grid=grid,
        in_specs=in_specs,
        out_specs=out_specs,
        compiler_params=pltpu.CompilerParams(
            dimension_semantics=("parallel",)),
        cost_estimate=cost,
    )(x, c, y2d,
      w1x, w1c, b1, emb,
      w2p, b2, w3p, b3,
      w4p, b4p)

    return out[:B, :n]


def init_params(key, n_steps, M, n, N):
    """Deterministic init; Linear weights stored (in, out); embeddings U[0,1)."""
    ks = jax.random.split(key, 12)
    d_in1 = 2 * n + M
    s1 = 1.0 / jnp.sqrt(jnp.float32(d_in1))
    sN = 1.0 / jnp.sqrt(jnp.float32(N))
    return dict(
        w1=jax.random.uniform(ks[0], (d_in1, N), jnp.float32, -s1, s1),
        b1=jax.random.uniform(ks[1], (N,), jnp.float32, -s1, s1),
        e1=jax.random.uniform(ks[2], (n_steps, N), jnp.float32, 0.0, 1.0),
        w2=jax.random.uniform(ks[3], (N, N), jnp.float32, -sN, sN),
        b2=jax.random.uniform(ks[4], (N,), jnp.float32, -sN, sN),
        e2=jax.random.uniform(ks[5], (n_steps, N), jnp.float32, 0.0, 1.0),
        w3=jax.random.uniform(ks[6], (N, N), jnp.float32, -sN, sN),
        b3=jax.random.uniform(ks[7], (N,), jnp.float32, -sN, sN),
        e3=jax.random.uniform(ks[8], (n_steps, N), jnp.float32, 0.0, 1.0),
        w4=jax.random.uniform(ks[9], (N, n), jnp.float32, -sN, sN),
        b4=jax.random.uniform(ks[10], (n,), jnp.float32, -sN, sN),
    )


def reference_forward(x, y, c, params):
    """Pure-JAX reference matching the PyTorch module."""
    def softplus(v):
        return jnp.logaddexp(v, 0.0)
    xc = jnp.concatenate([x, c], axis=1)
    h = softplus(params["e1"][y] * (xc @ params["w1"] + params["b1"]))
    h = softplus(params["e2"][y] * (h @ params["w2"] + params["b2"]))
    h = softplus(params["e3"][y] * (h @ params["w3"] + params["b3"]))
    return h @ params["w4"] + params["b4"]


if __name__ == "__main__":
    n_steps, M, n, N = 16, 16, 8, 128
    B = 8

    key = jax.random.PRNGKey(0)
    kp, kx, ky, kc = jax.random.split(key, 4)
    params = init_params(kp, n_steps, M, n, N)
    x = jax.random.normal(kx, (B, 2 * n), dtype=jnp.float32)
    c = jax.random.normal(kc, (B, M), dtype=jnp.float32)
    y = jax.random.randint(ky, (B,), 0, n_steps, dtype=jnp.int32)

    out = conditional_model_forward(x, y, c, params)
    out = jax.block_until_ready(out)

    ref = reference_forward(x, y, c, params)
    assert out.shape == (B, n)
    assert jnp.allclose(out, ref, atol=1e-5, rtol=1e-5), "mismatch vs reference"

    print("KERNEL_OK")
</pallas_src>

<mosaic_0001>
module attributes {stable_mosaic.version = 11 : i64} {
  func.func @_cond_model_kernel(%arg0: i32, %arg1: memref<8x16xf32, #tpu.memory_space<vmem>>, %arg2: memref<8x16xf32, #tpu.memory_space<vmem>>, %arg3: memref<8x1xi32, #tpu.memory_space<vmem>>, %arg4: memref<16x128xf32, #tpu.memory_space<vmem>>, %arg5: memref<16x128xf32, #tpu.memory_space<vmem>>, %arg6: memref<1x128xf32, #tpu.memory_space<vmem>>, %arg7: memref<16x384xf32, #tpu.memory_space<vmem>>, %arg8: memref<128x128xf32, #tpu.memory_space<vmem>>, %arg9: memref<1x128xf32, #tpu.memory_space<vmem>>, %arg10: memref<128x128xf32, #tpu.memory_space<vmem>>, %arg11: memref<1x128xf32, #tpu.memory_space<vmem>>, %arg12: memref<128x128xf32, #tpu.memory_space<vmem>>, %arg13: memref<1x128xf32, #tpu.memory_space<vmem>>, %arg14: memref<8x128xf32, #tpu.memory_space<vmem>>) attributes {dimension_semantics = [#tpu.dimension_semantics<parallel>], iteration_bounds = array<i64: 1>, scalar_prefetch = 0 : i64, scratch_operands = 0 : i64, tpu.core_type = #tpu.core_type<tc>, window_params = [{transform_indices = @transform_0, window_bounds = array<i64: 8, 16>}, {transform_indices = @transform_1, window_bounds = array<i64: 8, 16>}, {transform_indices = @transform_2, window_bounds = array<i64: 8, 1>}, {pipeline_mode = #tpu.pipeline_mode<synchronous>, transform_indices = @transform_3, window_bounds = array<i64: 16, 128>}, {pipeline_mode = #tpu.pipeline_mode<synchronous>, transform_indices = @transform_4, window_bounds = array<i64: 16, 128>}, {pipeline_mode = #tpu.pipeline_mode<synchronous>, transform_indices = @transform_5, window_bounds = array<i64: 1, 128>}, {pipeline_mode = #tpu.pipeline_mode<synchronous>, transform_indices = @transform_6, window_bounds = array<i64: 16, 384>}, {pipeline_mode = #tpu.pipeline_mode<synchronous>, transform_indices = @transform_7, window_bounds = array<i64: 128, 128>}, {pipeline_mode = #tpu.pipeline_mode<synchronous>, transform_indices = @transform_8, window_bounds = array<i64: 1, 128>}, {pipeline_mode = #tpu.pipeline_mode<synchronous>, transform_indices = @transform_9, window_bounds = array<i64: 128, 128>}, {pipeline_mode = #tpu.pipeline_mode<synchronous>, transform_indices = @transform_10, window_bounds = array<i64: 1, 128>}, {pipeline_mode = #tpu.pipeline_mode<synchronous>, transform_indices = @transform_11, window_bounds = array<i64: 128, 128>}, {pipeline_mode = #tpu.pipeline_mode<synchronous>, transform_indices = @transform_12, window_bounds = array<i64: 1, 128>}, {transform_indices = @transform_13, window_bounds = array<i64: 8, 128>}]} {
    %c0 = arith.constant 0 : index
    %c0_0 = arith.constant 0 : index
    %0 = vector.load %arg1[%c0, %c0_0] : memref<8x16xf32, #tpu.memory_space<vmem>>, vector<8x16xf32>
    %c0_1 = arith.constant 0 : index
    %c0_2 = arith.constant 0 : index
    %1 = vector.load %arg2[%c0_1, %c0_2] : memref<8x16xf32, #tpu.memory_space<vmem>>, vector<8x16xf32>
    %c0_3 = arith.constant 0 : index
    %c0_4 = arith.constant 0 : index
    %2 = vector.load %arg3[%c0_3, %c0_4] : memref<8x1xi32, #tpu.memory_space<vmem>>, vector<8x1xi32>
    %3 = tpu.iota {dimensions = array<i32: 1>} : vector<8x16xi32>
    %4 = vector.broadcast %2 : vector<8x1xi32> to vector<8x16xi32>
    %5 = arith.cmpi eq, %3, %4 : vector<8x16xi32>
    %6 = arith.extui %5 : vector<8x16xi1> to vector<8x16xi32>
    %7 = arith.sitofp %6 : vector<8x16xi32> to vector<8x16xf32>
    %c0_5 = arith.constant 0 : index
    %c0_6 = arith.constant 0 : index
    %8 = vector.load %arg7[%c0_5, %c0_6] : memref<16x384xf32, #tpu.memory_space<vmem>>, vector<16x384xf32>
    %cst = arith.constant dense<0.000000e+00> : vector<8x384xf32>
    %9 = tpu.matmul %7, %8, %cst {dimension_numbers = #tpu.dot_dimension_numbers<[1], [0], [0], [1], [0, 0, 1, 1], [], []>} : vector<8x16xf32>, vector<16x384xf32>, vector<8x384xf32> -> vector<8x384xf32>
    %10 = vector.extract_strided_slice %9 {offsets = [0, 0], sizes = [8, 128], strides = [1, 1]} : vector<8x384xf32> to vector<8x128xf32>
    %11 = vector.extract_strided_slice %9 {offsets = [0, 128], sizes = [8, 128], strides = [1, 1]} : vector<8x384xf32> to vector<8x128xf32>
    %12 = vector.extract_strided_slice %9 {offsets = [0, 256], sizes = [8, 128], strides = [1, 1]} : vector<8x384xf32> to vector<8x128xf32>
    %c0_7 = arith.constant 0 : index
    %c0_8 = arith.constant 0 : index
    %13 = vector.load %arg4[%c0_7, %c0_8] : memref<16x128xf32, #tpu.memory_space<vmem>>, vector<16x128xf32>
    %cst_9 = arith.constant dense<0.000000e+00> : vector<8x128xf32>
    %14 = tpu.matmul %0, %13, %cst_9 {dimension_numbers = #tpu.dot_dimension_numbers<[1], [0], [0], [1], [0, 0, 1, 1], [], []>} : vector<8x16xf32>, vector<16x128xf32>, vector<8x128xf32> -> vector<8x128xf32>
    %c0_10 = arith.constant 0 : index
    %c0_11 = arith.constant 0 : index
    %15 = vector.load %arg5[%c0_10, %c0_11] : memref<16x128xf32, #tpu.memory_space<vmem>>, vector<16x128xf32>
    %cst_12 = arith.constant dense<0.000000e+00> : vector<8x128xf32>
    %16 = tpu.matmul %1, %15, %cst_12 {dimension_numbers = #tpu.dot_dimension_numbers<[1], [0], [0], [1], [0, 0, 1, 1], [], []>} : vector<8x16xf32>, vector<16x128xf32>, vector<8x128xf32> -> vector<8x128xf32>
    %17 = arith.addf %14, %16 : vector<8x128xf32>
    %c0_13 = arith.constant 0 : index
    %c0_14 = arith.constant 0 : index
    %18 = vector.load %arg6[%c0_13, %c0_14] : memref<1x128xf32, #tpu.memory_space<vmem>>, vector<1x128xf32>
    %19 = vector.broadcast %18 : vector<1x128xf32> to vector<8x128xf32>
    %20 = arith.addf %17, %19 : vector<8x128xf32>
    %21 = arith.mulf %10, %20 : vector<8x128xf32>
    %cst_15 = arith.constant 0.000000e+00 : f32
    %22 = vector.broadcast %cst_15 : f32 to vector<8x128xf32>
    %23 = arith.maximumf %21, %22 : vector<8x128xf32>
    %24 = math.absf %21 : vector<8x128xf32>
    %cst_16 = arith.constant 0.000000e+00 : f32
    %25 = vector.broadcast %cst_16 : f32 to vector<8x128xf32>
    %26 = arith.subf %25, %24 : vector<8x128xf32>
    %27 = math.exp %26 : vector<8x128xf32>
    %cst_17 = arith.constant 1.000000e+00 : f32
    %28 = vector.broadcast %cst_17 : f32 to vector<8x128xf32>
    %29 = arith.addf %28, %27 : vector<8x128xf32>
    %30 = math.log %29 : vector<8x128xf32>
    %31 = arith.addf %23, %30 : vector<8x128xf32>
    %c0_18 = arith.constant 0 : index
    %c0_19 = arith.constant 0 : index
    %32 = vector.load %arg8[%c0_18, %c0_19] : memref<128x128xf32, #tpu.memory_space<vmem>>, vector<128x128xf32>
    %cst_20 = arith.constant dense<0.000000e+00> : vector<8x128xf32>
    %33 = tpu.matmul %31, %32, %cst_20 {dimension_numbers = #tpu.dot_dimension_numbers<[1], [0], [0], [1], [0, 0, 1, 1], [], []>} : vector<8x128xf32>, vector<128x128xf32>, vector<8x128xf32> -> vector<8x128xf32>
    %c0_21 = arith.constant 0 : index
    %c0_22 = arith.constant 0 : index
    %34 = vector.load %arg9[%c0_21, %c0_22] : memref<1x128xf32, #tpu.memory_space<vmem>>, vector<1x128xf32>
    %35 = vector.broadcast %34 : vector<1x128xf32> to vector<8x128xf32>
    %36 = arith.addf %33, %35 : vector<8x128xf32>
    %37 = arith.mulf %11, %36 : vector<8x128xf32>
    %cst_23 = arith.constant 0.000000e+00 : f32
    %38 = vector.broadcast %cst_23 : f32 to vector<8x128xf32>
    %39 = arith.maximumf %37, %38 : vector<8x128xf32>
    %40 = math.absf %37 : vector<8x128xf32>
    %cst_24 = arith.constant 0.000000e+00 : f32
    %41 = vector.broadcast %cst_24 : f32 to vector<8x128xf32>
    %42 = arith.subf %41, %40 : vector<8x128xf32>
    %43 = math.exp %42 : vector<8x128xf32>
    %cst_25 = arith.constant 1.000000e+00 : f32
    %44 = vector.broadcast %cst_25 : f32 to vector<8x128xf32>
    %45 = arith.addf %44, %43 : vector<8x128xf32>
    %46 = math.log %45 : vector<8x128xf32>
    %47 = arith.addf %39, %46 : vector<8x128xf32>
    %c0_26 = arith.constant 0 : index
    %c0_27 = arith.constant 0 : index
    %48 = vector.load %arg10[%c0_26, %c0_27] : memref<128x128xf32, #tpu.memory_space<vmem>>, vector<128x128xf32>
    %cst_28 = arith.constant dense<0.000000e+00> : vector<8x128xf32>
    %49 = tpu.matmul %47, %48, %cst_28 {dimension_numbers = #tpu.dot_dimension_numbers<[1], [0], [0], [1], [0, 0, 1, 1], [], []>} : vector<8x128xf32>, vector<128x128xf32>, vector<8x128xf32> -> vector<8x128xf32>
    %c0_29 = arith.constant 0 : index
    %c0_30 = arith.constant 0 : index
    %50 = vector.load %arg11[%c0_29, %c0_30] : memref<1x128xf32, #tpu.memory_space<vmem>>, vector<1x128xf32>
    %51 = vector.broadcast %50 : vector<1x128xf32> to vector<8x128xf32>
    %52 = arith.addf %49, %51 : vector<8x128xf32>
    %53 = arith.mulf %12, %52 : vector<8x128xf32>
    %cst_31 = arith.constant 0.000000e+00 : f32
    %54 = vector.broadcast %cst_31 : f32 to vector<8x128xf32>
    %55 = arith.maximumf %53, %54 : vector<8x128xf32>
    %56 = math.absf %53 : vector<8x128xf32>
    %cst_32 = arith.constant 0.000000e+00 : f32
    %57 = vector.broadcast %cst_32 : f32 to vector<8x128xf32>
    %58 = arith.subf %57, %56 : vector<8x128xf32>
    %59 = math.exp %58 : vector<8x128xf32>
    %cst_33 = arith.constant 1.000000e+00 : f32
    %60 = vector.broadcast %cst_33 : f32 to vector<8x128xf32>
    %61 = arith.addf %60, %59 : vector<8x128xf32>
    %62 = math.log %61 : vector<8x128xf32>
    %63 = arith.addf %55, %62 : vector<8x128xf32>
    %c0_34 = arith.constant 0 : index
    %c0_35 = arith.constant 0 : index
    %64 = vector.load %arg12[%c0_34, %c0_35] : memref<128x128xf32, #tpu.memory_space<vmem>>, vector<128x128xf32>
    %cst_36 = arith.constant dense<0.000000e+00> : vector<8x128xf32>
    %65 = tpu.matmul %63, %64, %cst_36 {dimension_numbers = #tpu.dot_dimension_numbers<[1], [0], [0], [1], [0, 0, 1, 1], [], []>} : vector<8x128xf32>, vector<128x128xf32>, vector<8x128xf32> -> vector<8x128xf32>
    %c0_37 = arith.constant 0 : index
    %c0_38 = arith.constant 0 : index
    %66 = vector.load %arg13[%c0_37, %c0_38] : memref<1x128xf32, #tpu.memory_space<vmem>>, vector<1x128xf32>
    %67 = vector.broadcast %66 : vector<1x128xf32> to vector<8x128xf32>
    %68 = arith.addf %65, %67 : vector<8x128xf32>
    %c0_39 = arith.constant 0 : index
    %c0_40 = arith.constant 0 : index
    %69 = vector.load %arg14[%c0_39, %c0_40] : memref<8x128xf32, #tpu.memory_space<vmem>>, vector<8x128xf32>
    tpu.vector_store %arg14[%c0_39, %c0_40], %68 {strides = array<i32>} : memref<8x128xf32, #tpu.memory_space<vmem>>, vector<8x128xf32>,
    return
  }
  func.func @transform_0(%arg0: i32) -> (i32, i32) {
    %c0_i32 = arith.constant 0 : i32
    %c0_i32_0 = arith.constant 0 : i32
    return %arg0, %c0_i32 : i32, i32
  }
  func.func @transform_1(%arg0: i32) -> (i32, i32) {
    %c0_i32 = arith.constant 0 : i32
    %c0_i32_0 = arith.constant 0 : i32
    return %arg0, %c0_i32 : i32, i32
  }
  func.func @transform_2(%arg0: i32) -> (i32, i32) {
    %c0_i32 = arith.constant 0 : i32
    %c0_i32_0 = arith.constant 0 : i32
    return %arg0, %c0_i32 : i32, i32
  }
  func.func @transform_3(%arg0: i32) -> (i32, i32) {
    %c0_i32 = arith.constant 0 : i32
    %c0_i32_0 = arith.constant 0 : i32
    %c0_i32_1 = arith.constant 0 : i32
    return %c0_i32, %c0_i32_0 : i32, i32
  }
  func.func @transform_4(%arg0: i32) -> (i32, i32) {
    %c0_i32 = arith.constant 0 : i32
    %c0_i32_0 = arith.constant 0 : i32
    %c0_i32_1 = arith.constant 0 : i32
    return %c0_i32, %c0_i32_0 : i32, i32
  }
  func.func @transform_5(%arg0: i32) -> (i32, i32) {
    %c0_i32 = arith.constant 0 : i32
    %c0_i32_0 = arith.constant 0 : i32
    %c0_i32_1 = arith.constant 0 : i32
    return %c0_i32, %c0_i32_0 : i32, i32
  }
  func.func @transform_6(%arg0: i32) -> (i32, i32) {
    %c0_i32 = arith.constant 0 : i32
    %c0_i32_0 = arith.constant 0 : i32
    %c0_i32_1 = arith.constant 0 : i32
    return %c0_i32, %c0_i32_0 : i32, i32
  }
  func.func @transform_7(%arg0: i32) -> (i32, i32) {
    %c0_i32 = arith.constant 0 : i32
    %c0_i32_0 = arith.constant 0 : i32
    %c0_i32_1 = arith.constant 0 : i32
    return %c0_i32, %c0_i32_0 : i32, i32
  }
  func.func @transform_8(%arg0: i32) -> (i32, i32) {
    %c0_i32 = arith.constant 0 : i32
    %c0_i32_0 = arith.constant 0 : i32
    %c0_i32_1 = arith.constant 0 : i32
    return %c0_i32, %c0_i32_0 : i32, i32
  }
  func.func @transform_9(%arg0: i32) -> (i32, i32) {
    %c0_i32 = arith.constant 0 : i32
    %c0_i32_0 = arith.constant 0 : i32
    %c0_i32_1 = arith.constant 0 : i32
    return %c0_i32, %c0_i32_0 : i32, i32
  }
  func.func @transform_10(%arg0: i32) -> (i32, i32) {
    %c0_i32 = arith.constant 0 : i32
    %c0_i32_0 = arith.constant 0 : i32
    %c0_i32_1 = arith.constant 0 : i32
    return %c0_i32, %c0_i32_0 : i32, i32
  }
  func.func @transform_11(%arg0: i32) -> (i32, i32) {
    %c0_i32 = arith.constant 0 : i32
    %c0_i32_0 = arith.constant 0 : i32
    %c0_i32_1 = arith.constant 0 : i32
    return %c0_i32, %c0_i32_0 : i32, i32
  }
  func.func @transform_12(%arg0: i32) -> (i32, i32) {
    %c0_i32 = arith.constant 0 : i32
    %c0_i32_0 = arith.constant 0 : i32
    %c0_i32_1 = arith.constant 0 : i32
    return %c0_i32, %c0_i32_0 : i32, i32
  }
  func.func @transform_13(%arg0: i32) -> (i32, i32) {
    %c0_i32 = arith.constant 0 : i32
    %c0_i32_0 = arith.constant 0 : i32
    return %arg0, %c0_i32 : i32, i32
  }
}

</mosaic_0001>

<bundles_post_ra>
// kernel: tpu_custom_call.1
= control target key start
LH: loop header
LB: loop body
LE: loop exit
PB: predicated region body
PF: predicated region fallthrough
CT: control target
= control target key end

     0   :  { %18 = vsyncpa [#allocation3], 0  ;;  %s1397_s0 = inlined_call_operand.hbm [shape: f32[8,16], index: 0, kind: input, shape index: {}]   ;;  %s1398_s1 = inlined_call_operand.hbm [shape: f32[8,16], index: 1, kind: input, shape index: {}]   ;;  %s1399_s2 = inlined_call_operand.vmem [shape: s32[8,1], index: 2, kind: input, shape index: {}]   ;;  %s1400_s3 = inlined_call_operand.hbm [shape: f32[16,128], index: 3, kind: input, shape index: {}]   ;;  %s1401_s4 = inlined_call_operand.vmem [shape: f32[16,128], index: 4, kind: input, shape index: {}]   ;;  %s1402_s5 = inlined_call_operand.vmem [shape: f32[1,128], index: 5, kind: input, shape index: {}]   ;;  %s1403_s6 = inlined_call_operand.hbm [shape: f32[16,384], index: 6, kind: input, shape index: {}]   ;;  %s1404_s7 = inlined_call_operand.hbm [shape: f32[128,128], index: 7, kind: input, shape index: {}]   ;;  %s1405_s8 = inlined_call_operand.vmem [shape: f32[1,128], index: 8, kind: input, shape index: {}]   ;;  %s1406_s9 = inlined_call_operand.hbm [shape: f32[128,128], index: 9, kind: input, shape index: {}]   ;;  %s1407_s10 = inlined_call_operand.vmem [shape: f32[1,128], index: 10, kind: input, shape index: {}]   ;;  %s1408_s11 = inlined_call_operand.hbm [shape: f32[128,128], index: 11, kind: input, shape index: {}]   ;;  %s1409_s12 = inlined_call_operand.vmem [shape: f32[1,128], index: 12, kind: input, shape index: {}]   ;;  %s1410_s13 = inlined_call_operand.hbm [shape: f32[8,128], index: 13, kind: output, shape index: {}]  }
   0x1   :  { %19 = vsyncpa [#allocation6], 0 }
   0x2   :  { %20 = vsyncpa [#allocation9], 0 }
   0x3   :  { %21 = vsyncpa [#allocation12], 0 }
   0x4   :  { %22 = vsyncpa [#allocation4], 0  ;;  %s1177_s25 = smov [#allocation5]   ;;  %s1178_s27 = smov [#allocation8]  }
   0x5   :  { %s39_s26 = sshll.u32 %s1177_s25, 4  ;;  %s66_s28 = sshll.u32 %s1178_s27, 4  ;;  %s40_s26 = int_to_ptr.vmem [resolvable:$true] %s39_s26  ;;  %s67_s28 = int_to_ptr.vmem [resolvable:$true] %s66_s28 }
   0x6   :  { %s1015_s29 = scalar_lea.vmem %s40_s26, 128  ;;  %p1020_p1 = scmp.lt.s32.totalorder %s40_s26, %s40_s26 }
   0x7   :  { %p1016_p0 = scmp.ne.s32.totalorder %s40_s26, %s1015_s29  ;;  %p1021_p2 = scmp.lt.s32.totalorder %s1015_s29, %s1015_s29 }
   0x9   :  { %p1022_p3 = por %p1021_p2, %p1020_p1 }
   0xb   :  { %p1023_p4 = pnand %p1022_p3, %p1016_p0 }
   0xd   :  { %1026 = shalt.err (!%p1023_p4)
}
   0xe   :  { %42 = dma.hbm_to_vmem [thread:$0]  %s1398_s1, 128, %s40_s26, [#allocation6]  }
   0xf   :  { %s1035_s15 = scalar_lea.vmem %s67_s28, 768  ;;  %p1040_p6 = scmp.lt.s32.totalorder %s67_s28, %s67_s28 }
  0x10   :  { %p1036_p5 = scmp.ne.s32.totalorder %s67_s28, %s1035_s15  ;;  %p1041_p7 = scmp.lt.s32.totalorder %s1035_s15, %s1035_s15 }
  0x12   :  { %p1042_p8 = por %p1041_p7, %p1040_p6 }
  0x14   :  { %p1043_p9 = pnand %p1042_p8, %p1036_p5 }
  0x16   :  { %1046 = shalt.err (!%p1043_p9)
}
  0x17   :  { %s1179_s16 = smov 384   ;;  %s1180_s17 = smov 24  }
  0x18   :  { %72 = dma.hbm_to_vmem [thread:$0]  %s1403_s6, 768, %s67_s28, [#allocation9], %s1179_s16, %s1179_s16, %s1180_s17  }
  0x19   :  { %s1181_s20 = smov [#allocation11]   ;;  %s1182_s22 = smov [#allocation2]  }
  0x1a   :  { %s92_s21 = sshll.u32 %s1181_s20, 4  ;;  %s29_s23 = sshll.u32 %s1182_s22, 4  ;;  %s93_s21 = int_to_ptr.vmem [resolvable:$true] %s92_s21  ;;  %s30_s23 = int_to_ptr.vmem [resolvable:$true] %s29_s23 }
  0x1b   :  { %s1055_s1 = scalar_lea.vmem %s93_s21, 2048  ;;  %p1060_p11 = scmp.lt.s32.totalorder %s93_s21, %s93_s21 }
  0x1c   :  { %p1056_p10 = scmp.ne.s32.totalorder %s93_s21, %s1055_s1  ;;  %p1061_p12 = scmp.lt.s32.totalorder %s1055_s1, %s1055_s1 }
  0x1e   :  { %p1062_p13 = por %p1061_p12, %p1060_p11 }
  0x20   :  { %p1063_p0 = pnand %p1062_p13, %p1056_p10 }
  0x22   :  { %1066 = shalt.err (!%p1063_p0)
}
  0x23   :  { %s1183_s24 = smov 128   ;;  %s1184_s25 = smov 8  }
  0x24   :  { %98 = dma.hbm_to_vmem [thread:$0]  %s1406_s9, 2048, %s93_s21, [#allocation12], %s1183_s24, %s1183_s24, %s1184_s25  }
  0x25   :  { %s1075_s27 = scalar_lea.vmem %s30_s23, 128  ;;  %p1080_p2 = scmp.lt.s32.totalorder %s30_s23, %s30_s23 }
  0x26   :  { %p1076_p1 = scmp.ne.s32.totalorder %s30_s23, %s1075_s27  ;;  %p1081_p3 = scmp.lt.s32.totalorder %s1075_s27, %s1075_s27 }
  0x28   :  { %p1082_p4 = por %p1081_p3, %p1080_p2 }
  0x2a   :  { %p1083_p5 = pnand %p1082_p4, %p1076_p1 }
  0x2c   :  { %1086 = shalt.err (!%p1083_p5)
}
  0x2d   :  { %32 = dma.hbm_to_vmem [thread:$0]  %s1397_s0, 128, %s30_s23, [#allocation3]  }
  0x2e   :  { %s1185_s30 = smov [#allocation7]   ;;  %s1186_s15 = smov [#allocation10]  }
  0x2f   :  { %s50_s14 = sshll.u32 %s1185_s30, 4  ;;  %s78_s16 = sshll.u32 %s1186_s15, 4  ;;  %s51_s14 = int_to_ptr.vmem [resolvable:$true] %s50_s14  ;;  %s79_s16 = int_to_ptr.vmem [resolvable:$true] %s78_s16 }
  0x30   :  { %s1095_s17 = scalar_lea.vmem %s51_s14, 256  ;;  %p1100_p7 = scmp.lt.s32.totalorder %s51_s14, %s51_s14 }
  0x31   :  { %p1096_p6 = scmp.ne.s32.totalorder %s51_s14, %s1095_s17  ;;  %p1101_p8 = scmp.lt.s32.totalorder %s1095_s17, %s1095_s17 }
  0x33   :  { %p1102_p9 = por %p1101_p8, %p1100_p7 }
  0x35   :  { %p1103_p10 = pnand %p1102_p9, %p1096_p6 }
  0x37   :  { %1106 = shalt.err (!%p1103_p10)
}
  0x38   :  { %56 = dma.hbm_to_vmem [thread:$0]  %s1400_s3, 256, %s51_s14, [#allocation6], %s1183_s24, %s1183_s24, %s1184_s25  }
  0x39   :  { %s1115_s0 = scalar_lea.vmem %s79_s16, 2048  ;;  %p1120_p12 = scmp.lt.s32.totalorder %s79_s16, %s79_s16 }
  0x3a   :  { %p1116_p11 = scmp.ne.s32.totalorder %s79_s16, %s1115_s0  ;;  %p1121_p13 = scmp.lt.s32.totalorder %s1115_s0, %s1115_s0 }
  0x3c   :  { %p1122_p0 = por %p1121_p13, %p1120_p12 }
  0x3e   :  { %p1123_p1 = pnand %p1122_p0, %p1116_p11 }
  0x40   :  { %1126 = shalt.err (!%p1123_p1)
}
  0x41   :  { %84 = dma.hbm_to_vmem [thread:$0]  %s1404_s7, 2048, %s79_s16, [#allocation9], %s1183_s24, %s1183_s24, %s1184_s25  }
  0x42   :  { %s1187_s21 = smov [#allocation13]  }
  0x43   :  { %s106_s22 = sshll.u32 %s1187_s21, 4  ;;  %s107_s22 = int_to_ptr.vmem [resolvable:$true] %s106_s22 }
  0x44   :  { %s1135_s23 = scalar_lea.vmem %s107_s22, 2048  ;;  %p1140_p3 = scmp.lt.s32.totalorder %s107_s22, %s107_s22 }
  0x45   :  { %p1136_p2 = scmp.ne.s32.totalorder %s107_s22, %s1135_s23  ;;  %p1141_p4 = scmp.lt.s32.totalorder %s1135_s23, %s1135_s23 }
  0x47   :  { %p1142_p5 = por %p1141_p4, %p1140_p3 }
  0x49   :  { %p1143_p6 = pnand %p1142_p5, %p1136_p2 }
  0x4b   :  { %1146 = shalt.err (!%p1143_p6)
}
  0x4c   :  { %112 = dma.hbm_to_vmem [thread:$0]  %s1408_s11, 2048, %s107_s22, [#allocation12], %s1183_s24, %s1183_s24, %s1184_s25  }
  0x4d   :  { %1167 = dma.done.wait [#allocation3], 128  }
  0x4e   :  { %1168 = vsyncadd [#allocation3], 4294967168 }
  0x4f   :  { %1169 = dma.done.wait [#allocation6], 384  }
  0x50   :  { %1170 = vsyncadd [#allocation6], 4294966912 }
  0x51   :  { %1171 = dma.done.wait [#allocation9], 2816  }
  0x52   :  { %1172 = vsyncadd [#allocation9], 4294964480 }
  0x53   :  { %1173 = dma.done.wait [#allocation12], 4096  }
  0x54   :  { %1174 = vsyncadd [#allocation12], 4294963200  ;;  %v1188_v0 = vmov 0   ;;  %v1189_v1 = vmov 0.0   ;;  %v138_v2 = vld [vmem:[%s1399_s2] sm:$0xff]  ;;  %v150_v4 = vld [vmem:[#allocation8 + $0x18] sm:$0xff]  ;;  %v139_v7 = vlaneseq }
  0x55   :  { %994 = vset.pattern.permute.xlu0 %v1188_v0  ;;  %221 = vmatprep.mubr.f32.mxu1 %v1189_v1  ;;  %v151_v3 = vld [vmem:[#allocation8 + $0x20] sm:$0xff]  ;;  %v148_v5 = vld [vmem:[#allocation8 + $0x8] sm:$0xff]  ;;  %vm1190_vm0 = vmmov 0   ;;  %vm153_vm1 = vcmask 130048   ;;  %v149_v12 = vld [vmem:[#allocation8 + $0x10] sm:$0xff] }
  0x56   :  { %874 = vmatprep.subr.mxu0 %v1189_v1  ;;  %142 = vperm.xlu0 %994, %v138_v2   ;;  %v147_v6 = vld [vmem:[#allocation8] sm:$0xff]  ;;  %v140_v8 = vand.u32 127, %v139_v7  ;;  %v152_v10 = vld [vmem:[#allocation8 + $0x28] sm:$0xff]  ;;  %v299_v16 = vld [vmem:[#allocation7 + $0x8] sm:$0xff] }
  0x57   :  { %185 = vmatprep.subr.mxu1 %v151_v3  ;;  %906 = vmatprep.mubr.msk.f32.mxu0 %vm1190_vm0, %v1189_v1  ;;  %v301_v13 = vld [vmem:[%s1401_s4 + $0x8] sm:$0xff]  ;;  %v300_v14 = vld [vmem:[%s1401_s4] sm:$0xff]  ;;  %v298_v17 = vld [vmem:[#allocation7] sm:$0xff] }
  0x58   :  { %186 = vmatpush1.msra.mxu1 %v150_v4  ;;  %v137_v15 = vld [vmem:[#allocation5] sm:$0xff]  ;;  %v136_v18 = vld [vmem:[#allocation2] sm:$0xff]  ;;  %v479_v21 = vld [vmem:[#allocation10 + $0x68] sm:$0xff] }
  0x59   :  { %187 = vmatprep.subr.mxu1 %v148_v5  ;;  %v481_v19 = vld [vmem:[#allocation10 + $0x78] sm:$0xff]  ;;  %v480_v20 = vld [vmem:[#allocation10 + $0x70] sm:$0xff]  ;;  %v478_v22 = vld [vmem:[#allocation10 + $0x60] sm:$0xff] }
  0x5a   :  { %188 = vmatpush1.msra.mxu1 %v147_v6  ;;  %875 = vmatpush3.msra.mxu0 %v481_v19  ;;  %v477_v23 = vld [vmem:[#allocation10 + $0x58] sm:$0xff]  ;;  %v476_v24 = vld [vmem:[#allocation10 + $0x50] sm:$0xff]  ;;  %v475_v25 = vld [vmem:[#allocation10 + $0x48] sm:$0xff] }
  0x5b   :  { %853 = vmatprep.subr.mxu1 %v1189_v1  ;;  %876 = vmatprep.subr.mxu0 %v1189_v1  ;;  %v474_v26 = vld [vmem:[#allocation10 + $0x40] sm:$0xff]  ;;  %v473_v27 = vld [vmem:[#allocation10 + $0x38] sm:$0xff]  ;;  %v472_v28 = vld [vmem:[#allocation10 + $0x30] sm:$0xff] }
  0x5c   :  { %877 = vmatpush3.msra.mxu0 %v480_v20  ;;  %v471_v29 = vld [vmem:[#allocation10 + $0x28] sm:$0xff]  ;;  %v470_v30 = vld [vmem:[#allocation10 + $0x20] sm:$0xff]  ;;  %v469_v31 = vld [vmem:[#allocation10 + $0x18] sm:$0xff] }
  0x5d   :  { %878 = vmatprep.subr.mxu0 %v1189_v1  ;;  %v468_v32 = vld [vmem:[#allocation10 + $0x10] sm:$0xff]  ;;  %v467_v33 = vld [vmem:[#allocation10 + $0x8] sm:$0xff]  ;;  %v466_v34 = vld [vmem:[#allocation10] sm:$0xff] }
  0x5e   :  { %879 = vmatpush3.msra.mxu0 %v479_v21  ;;  %v789_v42 = vld [vmem:[%s1402_s5] ss:$0 sm:$0xff]  ;;  %v584_v56 = vld [vmem:[#allocation11 + $0x78] sm:$0xff]  ;;  %v582_v58 = vld [vmem:[#allocation11 + $0x68] sm:$0xff] }
  0x5f   :  { %880 = vmatprep.subr.mxu0 %v1189_v1  ;;  %v583_v57 = vld [vmem:[#allocation11 + $0x70] sm:$0xff]  ;;  %v581_v59 = vld [vmem:[#allocation11 + $0x60] sm:$0xff]  ;;  %v580_v60 = vld [vmem:[#allocation11 + $0x58] sm:$0xff] }
  0x60   :  { %881 = vmatpush3.msra.mxu0 %v478_v22  ;;  %v579_v61 = vld [vmem:[#allocation11 + $0x50] sm:$0xff]  ;;  %v578_v62 = vld [vmem:[#allocation11 + $0x48] sm:$0xff]  ;;  %v577_v63 = vld [vmem:[#allocation11 + $0x40] sm:$0xff] }
  0x61   :  { %882 = vmatprep.subr.mxu0 %v1189_v1  ;;  %v576_v0 = vld [vmem:[#allocation11 + $0x38] sm:$0xff]  ;;  %v575_v2 = vld [vmem:[#allocation11 + $0x30] sm:$0xff]  ;;  %v574_v3 = vld [vmem:[#allocation11 + $0x28] sm:$0xff] }
  0x62   :  { %883 = vmatpush3.msra.mxu0 %v477_v23  ;;  %v573_v4 = vld [vmem:[#allocation11 + $0x20] sm:$0xff]  ;;  %v572_v5 = vld [vmem:[#allocation11 + $0x18] sm:$0xff]  ;;  %v571_v6 = vld [vmem:[#allocation11 + $0x10] sm:$0xff] }
  0x63   :  { %884 = vmatprep.subr.mxu0 %v1189_v1  ;;  %v570_v7 = vld [vmem:[#allocation11 + $0x8] sm:$0xff]  ;;  %v687_v23 = vld [vmem:[#allocation13 + $0x78] sm:$0xff] }
  0x64   :  { %885 = vmatpush3.msra.mxu0 %v476_v24  ;;  %v686_v24 = vld [vmem:[#allocation13 + $0x70] sm:$0xff] }
  0x65   :  { %886 = vmatprep.subr.mxu0 %v1189_v1 }
  0x66   :  { %887 = vmatpush3.msra.mxu0 %v475_v25  ;;  %v685_v25 = vld [vmem:[#allocation13 + $0x68] sm:$0xff] }
  0x67   :  { %888 = vmatprep.subr.mxu0 %v1189_v1 }
  0x68   :  { %889 = vmatpush3.msra.mxu0 %v474_v26  ;;  %v684_v26 = vld [vmem:[#allocation13 + $0x60] sm:$0xff] }
  0x69   :  { %890 = vmatprep.subr.mxu0 %v1189_v1 }
  0x6a   :  { %891 = vmatpush3.msra.mxu0 %v473_v27  ;;  %v683_v27 = vld [vmem:[#allocation13 + $0x58] sm:$0xff] }
  0x6b   :  { %892 = vmatprep.subr.mxu0 %v1189_v1 }
  0x6c   :  { %893 = vmatpush3.msra.mxu0 %v472_v28  ;;  %v682_v28 = vld [vmem:[#allocation13 + $0x50] sm:$0xff] }
  0x6d   :  { %894 = vmatprep.subr.mxu0 %v1189_v1 }
  0x6e   :  { %895 = vmatpush3.msra.mxu0 %v471_v29  ;;  %v681_v29 = vld [vmem:[#allocation13 + $0x48] sm:$0xff] }
  0x6f   :  { %896 = vmatprep.subr.mxu0 %v1189_v1 }
  0x70   :  { %897 = vmatpush3.msra.mxu0 %v470_v30  ;;  %v680_v30 = vld [vmem:[#allocation13 + $0x40] sm:$0xff] }
  0x71   :  { %898 = vmatprep.subr.mxu0 %v1189_v1 }
  0x72   :  { %899 = vmatpush3.msra.mxu0 %v469_v31  ;;  %v679_v31 = vld [vmem:[#allocation13 + $0x38] sm:$0xff] }
  0x73   :  { %900 = vmatprep.subr.mxu0 %v1189_v1 }
  0x74   :  { %901 = vmatpush3.msra.mxu0 %v468_v32  ;;  %v678_v32 = vld [vmem:[#allocation13 + $0x30] sm:$0xff] }
  0x75   :  { %902 = vmatprep.subr.mxu0 %v1189_v1 }
  0x76   :  { %903 = vmatpush3.msra.mxu0 %v467_v33  ;;  %v677_v33 = vld [vmem:[#allocation13 + $0x28] sm:$0xff] }
  0x77   :  { %904 = vmatprep.subr.mxu0 %v1189_v1 }
  0x78   :  { %905 = vmatpush3.msra.mxu0 %v466_v34  ;;  %v676_v34 = vld [vmem:[#allocation13 + $0x20] sm:$0xff] }
  0x79   :  { %944 = vmatprep.subr.mxu0 %v1189_v1 }
  0xd1   :  { %v143_v9 = vpop.permute.xlu0 %142 }
  0xd2   :  { %vm144_vm2 = vcmp.eq.s32.totalorder %v140_v8, %v143_v9  ;;  %v569_v8 = vld [vmem:[#allocation11] sm:$0xff]  ;;  %v790_v9 = vld [vmem:[%s1405_s8] ss:$0 sm:$0xff] }
  0xd3   :  { %v784_v11 = vsel %vm144_vm2, 1.0, %v1189_v1 }
  0xd4   :  { %785 = vmatmul.mubr.msk.f32.vlgmr.msra.gmra.mxu1 %vm153_vm1, %v784_v11 }
  0xd5   :  { %854 = vmatpush3.msra.mxu1 %v152_v10  ;;  %857 = vmatprep.mubr.msk.f32.mxu1 %vm1190_vm0, %v1189_v1 }
  0xd6   :  { %855 = vmatprep.subr.mxu1 %v1189_v1 }
  0xd7   :  { %856 = vmatpush3.msra.mxu1 %v149_v12 }
  0xd8   :  { %860 = vmatprep.subr.mxu1 %v1189_v1  ;;  %858 = vmatmul.mubr.msk.f32.vlgmr.msra.gmra.mxu1 %vm153_vm1, %v784_v11 }
  0xd9   :  { %861 = vmatpush3.msra.mxu1 %v301_v13  ;;  %864 = vmatprep.mubr.msk.f32.mxu1 %vm1190_vm0, %v1189_v1 }
  0xda   :  { %862 = vmatprep.subr.mxu1 %v1189_v1 }
  0xdb   :  { %863 = vmatpush3.msra.mxu1 %v300_v14 }
  0xdc   :  { %867 = vmatprep.subr.mxu1 %v1189_v1  ;;  %865 = vmatmul.mubr.msk.f32.vlgmr.msra.gmra.mxu1 %vm153_vm1, %v137_v15 }
  0xdd   :  { %868 = vmatpush3.msra.mxu1 %v299_v16  ;;  %871 = vmatprep.mubr.msk.f32.mxu1 %vm1190_vm0, %v1189_v1 }
  0xde   :  { %869 = vmatprep.subr.mxu1 %v1189_v1 }
  0xdf   :  { %870 = vmatpush3.msra.mxu1 %v298_v17 }
  0xe0   :  { %872 = vmatmul.mubr.msk.f32.vlgmr.msra.gmra.mxu1 %vm153_vm1, %v136_v18  ;;  %909 = vmatprep.subr.mxu1 %v1189_v1 }
  0xe1   :  { %941 = vmatprep.mubr.msk.f32.mxu1 %vm1190_vm0, %v1189_v1  ;;  %910 = vmatpush3.msra.mxu1 %v584_v56 }
  0xe2   :  { %911 = vmatprep.subr.mxu1 %v1189_v1 }
  0xe3   :  { %912 = vmatpush3.msra.mxu1 %v583_v57 }
  0xe4   :  { %913 = vmatprep.subr.mxu1 %v1189_v1 }
  0xe5   :  { %914 = vmatpush3.msra.mxu1 %v582_v58 }
  0xe6   :  { %915 = vmatprep.subr.mxu1 %v1189_v1 }
  0xe7   :  { %916 = vmatpush3.msra.mxu1 %v581_v59 }
  0xe8   :  { %917 = vmatprep.subr.mxu1 %v1189_v1 }
  0xe9   :  { %918 = vmatpush3.msra.mxu1 %v580_v60 }
  0xea   :  { %919 = vmatprep.subr.mxu1 %v1189_v1 }
  0xeb   :  { %920 = vmatpush3.msra.mxu1 %v579_v61 }
  0xec   :  { %921 = vmatprep.subr.mxu1 %v1189_v1 }
  0xed   :  { %922 = vmatpush3.msra.mxu1 %v578_v62 }
  0xee   :  { %923 = vmatprep.subr.mxu1 %v1189_v1 }
  0xef   :  { %924 = vmatpush3.msra.mxu1 %v577_v63 }
  0xf0   :  { %925 = vmatprep.subr.mxu1 %v1189_v1 }
  0xf1   :  { %926 = vmatpush3.msra.mxu1 %v576_v0 }
  0xf2   :  { %927 = vmatprep.subr.mxu1 %v1189_v1 }
  0xf3   :  { %928 = vmatpush3.msra.mxu1 %v575_v2 }
  0xf4   :  { %929 = vmatprep.subr.mxu1 %v1189_v1 }
  0xf5   :  { %930 = vmatpush3.msra.mxu1 %v574_v3 }
  0xf6   :  { %931 = vmatprep.subr.mxu1 %v1189_v1 }
  0xf7   :  { %932 = vmatpush3.msra.mxu1 %v573_v4 }
  0xf8   :  { %933 = vmatprep.subr.mxu1 %v1189_v1 }
  0xf9   :  { %934 = vmatpush3.msra.mxu1 %v572_v5 }
  0xfa   :  { %935 = vmatprep.subr.mxu1 %v1189_v1 }
  0xfb   :  { %936 = vmatpush3.msra.mxu1 %v571_v6 }
  0xfc   :  { %937 = vmatprep.subr.mxu1 %v1189_v1 }
  0xfd   :  { %938 = vmatpush3.msra.mxu1 %v570_v7 }
  0xfe   :  { %939 = vmatprep.subr.mxu1 %v1189_v1 }
  0xff   :  { %940 = vmatpush3.msra.mxu1 %v569_v8 }
 0x194   :  { %v223_v35 = vpop.f32.mrf.mxu1 }
 0x196   :  { %v1344_v36 = vpop.f32.mrf.mxu1 }
 0x198   :  { %v1346_v37 = vpop.f32.mrf.mxu1 }
 0x19a   :  { %v859_v38 = vpop.f32.mrf.mxu1 }
 0x19b   :  { %v673_v38 = vld [vmem:[#allocation13 + $0x8] sm:$0xff] }
 0x19c   :  { %v371_v39 = vpop.f32.mrf.mxu1 }
 0x19e   :  { %v866_v40 = vpop.f32.mrf.mxu1 }
 0x19f   :  { %v791_v40 = vld [vmem:[%s1407_s10] ss:$0 sm:$0xff]  ;;  %s1191_s10 = smov [#allocation14]  }
 0x1a0   :  { %v444_v41 = vpop.f32.mrf.mxu1  ;;  %s772_s14 = sshll.u32 %s1191_s10, 4  ;;  %s773_s14 = int_to_ptr.vmem [resolvable:$true] %s772_s14 }
 0x1a1   :  { %v445_v43 = vadd.f32 %v444_v41, %v371_v39  ;;  %v672_v39 = vld [vmem:[#allocation13] sm:$0xff]  ;;  %s1147_s15 = scalar_lea.vmem %s773_s14, 128  ;;  %p1152_p8 = scmp.lt.s32.totalorder %s773_s14, %s773_s14 }
 0x1a2   :  { %v873_v44 = vpop.f32.mrf.mxu1  ;;  %p1148_p7 = scmp.ne.s32.totalorder %s773_s14, %s1147_s15  ;;  %p1153_p9 = scmp.lt.s32.totalorder %s1147_s15, %s1147_s15 }
 0x1a3   :  { %v455_v45 = vadd.f32 %v789_v42, %v445_v43 }
 0x1a4   :  { %p1154_p10 = por %p1153_p9, %p1152_p8 }
 0x1a5   :  { %v456_v46 = vmul.f32 %v455_v45, %v223_v35  ;;  %v675_v35 = vld [vmem:[#allocation13 + $0x18] sm:$0xff] }
 0x1a6   :  { %p1155_p11 = pnand %p1154_p10, %p1148_p7 }
 0x1a7   :  { %v458_v47 = vand.u32 2147483647, %v456_v46  ;;  %v457_v53 = vmax.f32 %v456_v46, 0.0 }
 0x1a9   :  { %v459_v48 = vsub.f32 0.0, %v458_v47 }
 0x1ab   :  { %v460_v49 = vmul.f32 1.442695, %v459_v48 }
 0x1ad   :  { %995 = vpow2.f32 %v460_v49 }
 0x1ba   :  { %v996_v50 = vpop.eup %995 }
 0x1bb   :  { %v462_v51 = vadd.f32 1.0, %v996_v50 }
 0x1bd   :  { %997 = vlog2.f32 %v462_v51 }
 0x1ca   :  { %v998_v52 = vpop.eup %997 }
 0x1cb   :  { %v464_v54 = vmul.f32 0.6931472, %v998_v52 }
 0x1cd   :  { %v465_v55 = vadd.f32 %v464_v54, %v457_v53  ;;  %v792_v53 = vld [vmem:[%s1409_s12] ss:$0 sm:$0xff] }
 0x1cf   :  { %907 = vmatmul.mubr.f32.vlgmr.msra.gmra.mxu0 %v465_v55 }
 0x1d0   :  { %976 = vmatprep.mubr.msk.f32.mxu0 %vm1190_vm0, %v1189_v1  ;;  %945 = vmatpush3.msra.mxu0 %v687_v23 }
 0x1d1   :  { %946 = vmatprep.subr.mxu0 %v1189_v1 }
 0x1d2   :  { %947 = vmatpush3.msra.mxu0 %v686_v24 }
 0x1d3   :  { %948 = vmatprep.subr.mxu0 %v1189_v1 }
 0x1d4   :  { %949 = vmatpush3.msra.mxu0 %v685_v25 }
 0x1d5   :  { %950 = vmatprep.subr.mxu0 %v1189_v1 }
 0x1d6   :  { %951 = vmatpush3.msra.mxu0 %v684_v26 }
 0x1d7   :  { %952 = vmatprep.subr.mxu0 %v1189_v1 }
 0x1d8   :  { %953 = vmatpush3.msra.mxu0 %v683_v27 }
 0x1d9   :  { %954 = vmatprep.subr.mxu0 %v1189_v1 }
 0x1da   :  { %955 = vmatpush3.msra.mxu0 %v682_v28 }
 0x1db   :  { %956 = vmatprep.subr.mxu0 %v1189_v1 }
 0x1dc   :  { %957 = vmatpush3.msra.mxu0 %v681_v29 }
 0x1dd   :  { %958 = vmatprep.subr.mxu0 %v1189_v1 }
 0x1de   :  { %959 = vmatpush3.msra.mxu0 %v680_v30 }
 0x1df   :  { %960 = vmatprep.subr.mxu0 %v1189_v1 }
 0x1e0   :  { %961 = vmatpush3.msra.mxu0 %v679_v31 }
 0x1e1   :  { %962 = vmatprep.subr.mxu0 %v1189_v1 }
 0x1e2   :  { %963 = vmatpush3.msra.mxu0 %v678_v32 }
 0x1e3   :  { %964 = vmatprep.subr.mxu0 %v1189_v1 }
 0x1e4   :  { %965 = vmatpush3.msra.mxu0 %v677_v33 }
 0x1e5   :  { %966 = vmatprep.subr.mxu0 %v1189_v1 }
 0x1e6   :  { %967 = vmatpush3.msra.mxu0 %v676_v34 }
 0x1e7   :  { %968 = vmatprep.subr.mxu0 %v1189_v1 }
 0x1e8   :  { %969 = vmatpush3.msra.mxu0 %v675_v35 }
 0x1e9   :  { %970 = vmatprep.subr.mxu0 %v1189_v1 }
 0x28f   :  { %v555_v10 = vpop.f32.mrf.mxu0 }
 0x290   :  { %v556_v11 = vadd.f32 %v790_v9, %v555_v10 }
 0x291   :  { %v908_v12 = vpop.f32.mrf.mxu0 }
 0x292   :  { %v559_v13 = vmul.f32 %v556_v11, %v1344_v36  ;;  %v674_v36 = vld [vmem:[#allocation13 + $0x10] sm:$0xff] }
 0x293   :  { %971 = vmatpush3.msra.mxu0 %v674_v36 }
 0x294   :  { %v561_v14 = vand.u32 2147483647, %v559_v13  ;;  %v560_v20 = vmax.f32 %v559_v13, 0.0  ;;  %972 = vmatprep.subr.mxu0 %v1189_v1 }
 0x295   :  { %973 = vmatpush3.msra.mxu0 %v673_v38 }
 0x296   :  { %v562_v15 = vsub.f32 0.0, %v561_v14  ;;  %974 = vmatprep.subr.mxu0 %v1189_v1 }
 0x297   :  { %975 = vmatpush3.msra.mxu0 %v672_v39 }
 0x298   :  { %v563_v16 = vmul.f32 1.442695, %v562_v15 }
 0x29a   :  { %999 = vpow2.f32 %v563_v16 }
 0x2a7   :  { %v1000_v17 = vpop.eup %999 }
 0x2a8   :  { %v565_v18 = vadd.f32 1.0, %v1000_v17 }
 0x2aa   :  { %1001 = vlog2.f32 %v565_v18 }
 0x2b7   :  { %v1002_v19 = vpop.eup %1001 }
 0x2b8   :  { %v567_v21 = vmul.f32 0.6931472, %v1002_v19 }
 0x2ba   :  { %v568_v22 = vadd.f32 %v567_v21, %v560_v20 }
 0x2bc   :  { %942 = vmatmul.mubr.f32.vlgmr.msra.gmra.mxu1 %v568_v22 }
 0x37c   :  { %v658_v41 = vpop.f32.mrf.mxu1 }
 0x37d   :  { %v659_v42 = vadd.f32 %v791_v40, %v658_v41 }
 0x37e   :  { %v943_v43 = vpop.f32.mrf.mxu1 }
 0x37f   :  { %v662_v44 = vmul.f32 %v659_v42, %v1346_v37 }
 0x381   :  { %v664_v45 = vand.u32 2147483647, %v662_v44  ;;  %v663_v1 = vmax.f32 %v662_v44, 0.0 }
 0x383   :  { %v665_v46 = vsub.f32 0.0, %v664_v45 }
 0x385   :  { %v666_v47 = vmul.f32 1.442695, %v665_v46 }
 0x387   :  { %1003 = vpow2.f32 %v666_v47 }
 0x394   :  { %v1004_v48 = vpop.eup %1003 }
 0x395   :  { %v668_v49 = vadd.f32 1.0, %v1004_v48 }
 0x397   :  { %1005 = vlog2.f32 %v668_v49 }
 0x3a4   :  { %v1006_v50 = vpop.eup %1005 }
 0x3a5   :  { %v670_v51 = vmul.f32 0.6931472, %v1006_v50 }
 0x3a7   :  { %v671_v52 = vadd.f32 %v670_v51, %v663_v1 }
 0x3a9   :  { %977 = vmatmul.mubr.f32.vlgmr.msra.gmra.mxu0 %v671_v52 }
 0x469   :  { %v761_v54 = vpop.f32.mrf.mxu0 }
 0x46a   :  { %v762_v37 = vadd.f32 %v792_v53, %v761_v54 }
 0x46b   :  { %v978_v55 = vpop.f32.mrf.mxu0 }
 0x46c   :  { %765 = vst [vmem:[#allocation14] sm:$0xff] %v762_v37 }
 0x46d   :  { %1158 = shalt.err (!%p1155_p11)
}
 0x46e   :  { %775 = dma.vmem_to_hbm [thread:$0]  %s773_s14, 128, %s1410_s13, [#allocation4]  }
 0x46f   :  { %1175 = dma.done.wait [#allocation4], 128  }
 0x470   :  { %1176 = vsyncadd [#allocation4], 4294967168 }
 0x471   :  { %779 = vsyncpa [#allocation3], 1 }
 0x472   :  { %780 = vsyncpa [#allocation6], 1 }
 0x473   :  { %781 = vsyncpa [#allocation9], 1 }
 0x474   :  { %782 = vsyncpa [#allocation12], 1 }
 0x475   :  { %783 = vsyncpa [#allocation4], 1 }

</bundles_post_ra>
